<compile_context>
chip_gen: v7x
topology: tpu7x:2x2x1
jax: 0.10.0
libtpu: 0.0.40
codegen_flags: <defaults>
</compile_context>

<pallas_src>
import jax
import jax.numpy as jnp
from jax.experimental import pallas as pl
from jax.experimental.pallas import tpu as pltpu


LANES = 128
MAX_BLOCK_ROWS = 1024  # (1024, 128) f32 tile = 512 KiB per input block


def _round_up(x, m):
    return ((x + m - 1) // m) * m


def _make_iou_kernel(block_rows, n_rows):
    """Builds the partial-sum kernel. `block_rows`/`n_rows` are static."""
    needs_mask = (n_rows % block_rows) != 0

    def kernel(pred_ref, true_ref, inter_out_ref, sum_out_ref,
               inter_acc, sum_acc):
        i = pl.program_id(0)

        @pl.when(i == 0)
        def _():
            inter_acc[...] = jnp.zeros_like(inter_acc)
            sum_acc[...] = jnp.zeros_like(sum_acc)

        p = pred_ref[...].astype(jnp.float32)
        t = true_ref[...].astype(jnp.float32)

        if needs_mask:
            # Mask rows past the true extent of the array (partial last block).
            row = jax.lax.broadcasted_iota(jnp.int32, p.shape, 0)
            valid = (row + i * block_rows) < n_rows
            p = jnp.where(valid, p, 0.0)
            t = jnp.where(valid, t, 0.0)

        # Pure VPU work in the steady state; no per-step cross-lane reduce.
        inter_acc[...] += t * p
        sum_acc[...] += t + p

        @pl.when(i == pl.num_programs(0) - 1)
        def _():
            inter_out_ref[...] = jnp.sum(inter_acc[...], keepdims=True)
            sum_out_ref[...] = jnp.sum(sum_acc[...], keepdims=True)

    return kernel


def iou_pallas(y_pred, y_true, smooth=1.0):
    assert y_pred.shape == y_true.shape
    pred_f = jnp.ravel(y_pred)
    true_f = jnp.ravel(y_true)
    n = pred_f.shape[0]

    n_rows = n // LANES
    n_main = n_rows * LANES

    inter = jnp.float32(0.0)
    total = jnp.float32(0.0)

    if n_rows > 0:
        block_rows = min(MAX_BLOCK_ROWS, _round_up(n_rows, 8))
        n_blocks = pl.cdiv(n_rows, block_rows)

        pred2d = pred_f[:n_main].reshape(n_rows, LANES)
        true2d = true_f[:n_main].reshape(n_rows, LANES)

        kernel = _make_iou_kernel(block_rows, n_rows)

        inter_p, sum_p = pl.pallas_call(
            kernel,
            out_shape=(
                jax.ShapeDtypeStruct((1, 1), jnp.float32),
                jax.ShapeDtypeStruct((1, 1), jnp.float32),
            ),
            grid_spec=pltpu.PrefetchScalarGridSpec(
                num_scalar_prefetch=0,
                grid=(n_blocks,),
                in_specs=[
                    pl.BlockSpec((block_rows, LANES), lambda i: (i, 0)),
                    pl.BlockSpec((block_rows, LANES), lambda i: (i, 0)),
                ],
                out_specs=[
                    pl.BlockSpec((1, 1), lambda i: (0, 0)),
                    pl.BlockSpec((1, 1), lambda i: (0, 0)),
                ],
                scratch_shapes=[
                    pltpu.VMEM((block_rows, LANES), jnp.float32),  # sum(t*p)
                    pltpu.VMEM((block_rows, LANES), jnp.float32),  # sum(t+p)
                ],
            ),
            compiler_params=pltpu.CompilerParams(
                dimension_semantics=("arbitrary",)
            ),
        )(pred2d, true2d)

        inter = inter + inter_p[0, 0]
        total = total + sum_p[0, 0]

    if n_main != n:
        # Tail of < 128 elements: negligible, handled in plain JAX.
        pt = pred_f[n_main:].astype(jnp.float32)
        tt = true_f[n_main:].astype(jnp.float32)
        inter = inter + jnp.sum(tt * pt)
        total = total + jnp.sum(tt + pt)

    smooth = jnp.float32(smooth)
    union = total - inter
    return (inter + smooth) / (union + smooth)


def iou_ref(y_pred, y_true, smooth=1.0):
    p = jnp.ravel(y_pred).astype(jnp.float32)
    t = jnp.ravel(y_true).astype(jnp.float32)
    inter = jnp.sum(t * p)
    union = jnp.sum(t + p) - inter
    return (inter + smooth) / (union + smooth)


if __name__ == "__main__":
    key = jax.random.PRNGKey(0)
    k1, k2 = jax.random.split(key)
    # NCHW, like the PyTorch module's typical segmentation inputs
    y_pred = jax.random.uniform(k1, (2, 4, 16, 16), dtype=jnp.float32)
    y_true = (jax.random.uniform(k2, (2, 4, 16, 16)) > 0.5).astype(jnp.float32)

    score = iou_pallas(y_pred, y_true, smooth=1.0)
    jax.block_until_ready(score)

    ref = iou_ref(y_pred, y_true, smooth=1.0)
    assert jnp.allclose(score, ref, rtol=1e-5, atol=1e-6), (score, ref)
    print("KERNEL_OK")
</pallas_src>

<mosaic_0001>
module attributes {stable_mosaic.version = 11 : i64} {
  func.func @kernel(%arg0: i32, %arg1: memref<16x128xf32, #tpu.memory_space<vmem>>, %arg2: memref<16x128xf32, #tpu.memory_space<vmem>>, %arg3: memref<1x1xf32, #tpu.memory_space<vmem>>, %arg4: memref<1x1xf32, #tpu.memory_space<vmem>>, %arg5: memref<16x128xf32, #tpu.memory_space<vmem>>, %arg6: memref<16x128xf32, #tpu.memory_space<vmem>>) attributes {dimension_semantics = [#tpu.dimension_semantics<arbitrary>], iteration_bounds = array<i64: 1>, scalar_prefetch = 0 : i64, scratch_operands = 2 : i64, tpu.core_type = #tpu.core_type<tc>, window_params = [{transform_indices = @transform_0, window_bounds = array<i64: 16, 128>}, {transform_indices = @transform_1, window_bounds = array<i64: 16, 128>}, {pipeline_mode = #tpu.pipeline_mode<synchronous>, transform_indices = @transform_2, window_bounds = array<i64: 1, 1>}, {pipeline_mode = #tpu.pipeline_mode<synchronous>, transform_indices = @transform_3, window_bounds = array<i64: 1, 1>}]} {
    %c0_i32 = arith.constant 0 : i32
    %0 = arith.cmpi eq, %arg0, %c0_i32 : i32
    %1 = arith.extui %0 : i1 to i32
    %c0_i32_0 = arith.constant 0 : i32
    %2 = arith.cmpi ne, %1, %c0_i32_0 : i32
    scf.if %2 {
      %cst = arith.constant 0.000000e+00 : f32
      %16 = vector.broadcast %cst : f32 to vector<16x128xf32>
      %c0_14 = arith.constant 0 : index
      %c0_15 = arith.constant 0 : index
      %17 = vector.load %arg5[%c0_14, %c0_15] : memref<16x128xf32, #tpu.memory_space<vmem>>, vector<16x128xf32>
      tpu.vector_store %arg5[%c0_14, %c0_15], %16 {strides = array<i32>} : memref<16x128xf32, #tpu.memory_space<vmem>>, vector<16x128xf32>,
      %cst_16 = arith.constant 0.000000e+00 : f32
      %18 = vector.broadcast %cst_16 : f32 to vector<16x128xf32>
      %c0_17 = arith.constant 0 : index
      %c0_18 = arith.constant 0 : index
      %19 = vector.load %arg6[%c0_17, %c0_18] : memref<16x128xf32, #tpu.memory_space<vmem>>, vector<16x128xf32>
      tpu.vector_store %arg6[%c0_17, %c0_18], %18 {strides = array<i32>} : memref<16x128xf32, #tpu.memory_space<vmem>>, vector<16x128xf32>,
    } else {
    }
    %c0 = arith.constant 0 : index
    %c0_1 = arith.constant 0 : index
    %3 = vector.load %arg1[%c0, %c0_1] : memref<16x128xf32, #tpu.memory_space<vmem>>, vector<16x128xf32>
    %c0_2 = arith.constant 0 : index
    %c0_3 = arith.constant 0 : index
    %4 = vector.load %arg2[%c0_2, %c0_3] : memref<16x128xf32, #tpu.memory_space<vmem>>, vector<16x128xf32>
    %c0_4 = arith.constant 0 : index
    %c0_5 = arith.constant 0 : index
    %5 = vector.load %arg5[%c0_4, %c0_5] : memref<16x128xf32, #tpu.memory_space<vmem>>, vector<16x128xf32>
    %6 = arith.mulf %4, %3 : vector<16x128xf32>
    %7 = arith.addf %5, %6 : vector<16x128xf32>
    %c0_6 = arith.constant 0 : index
    %c0_7 = arith.constant 0 : index
    %8 = vector.load %arg5[%c0_6, %c0_7] : memref<16x128xf32, #tpu.memory_space<vmem>>, vector<16x128xf32>
    tpu.vector_store %arg5[%c0_6, %c0_7], %7 {strides = array<i32>} : memref<16x128xf32, #tpu.memory_space<vmem>>, vector<16x128xf32>,
    %c0_8 = arith.constant 0 : index
    %c0_9 = arith.constant 0 : index
    %9 = vector.load %arg6[%c0_8, %c0_9] : memref<16x128xf32, #tpu.memory_space<vmem>>, vector<16x128xf32>
    %10 = arith.addf %4, %3 : vector<16x128xf32>
    %11 = arith.addf %9, %10 : vector<16x128xf32>
    %c0_10 = arith.constant 0 : index
    %c0_11 = arith.constant 0 : index
    %12 = vector.load %arg6[%c0_10, %c0_11] : memref<16x128xf32, #tpu.memory_space<vmem>>, vector<16x128xf32>
    tpu.vector_store %arg6[%c0_10, %c0_11], %11 {strides = array<i32>} : memref<16x128xf32, #tpu.memory_space<vmem>>, vector<16x128xf32>,
    %c0_i32_12 = arith.constant 0 : i32
    %13 = arith.cmpi eq, %arg0, %c0_i32_12 : i32
    %14 = arith.extui %13 : i1 to i32
    %c0_i32_13 = arith.constant 0 : i32
    %15 = arith.cmpi ne, %14, %c0_i32_13 : i32
    scf.if %15 {
      %c0_14 = arith.constant 0 : index
      %c0_15 = arith.constant 0 : index
      %16 = vector.load %arg5[%c0_14, %c0_15] : memref<16x128xf32, #tpu.memory_space<vmem>>, vector<16x128xf32>
      %17 = vector.shape_cast %16 : vector<16x128xf32> to vector<1x16x128xf32>
      %cst = arith.constant dense<0.000000e+00> : vector<1xf32>
      %18 = vector.multi_reduction <add>, %17, %cst [1, 2] : vector<1x16x128xf32> to vector<1xf32>
      %19 = vector.shape_cast %18 : vector<1xf32> to vector<1x1x1xf32>
      %20 = vector.extract %19[0, 0, 0] : f32 from vector<1x1x1xf32>
      %21 = vector.broadcast %20 : f32 to vector<1x1xf32>
      %c0_16 = arith.constant 0 : index
      %c0_17 = arith.constant 0 : index
      %22 = vector.load %arg3[%c0_16, %c0_17] : memref<1x1xf32, #tpu.memory_space<vmem>>, vector<1x1xf32>
      tpu.vector_store %arg3[%c0_16, %c0_17], %21 {strides = array<i32>} : memref<1x1xf32, #tpu.memory_space<vmem>>, vector<1x1xf32>,
      %c0_18 = arith.constant 0 : index
      %c0_19 = arith.constant 0 : index
      %23 = vector.load %arg6[%c0_18, %c0_19] : memref<16x128xf32, #tpu.memory_space<vmem>>, vector<16x128xf32>
      %24 = vector.shape_cast %23 : vector<16x128xf32> to vector<1x16x128xf32>
      %cst_20 = arith.constant dense<0.000000e+00> : vector<1xf32>
      %25 = vector.multi_reduction <add>, %24, %cst_20 [1, 2] : vector<1x16x128xf32> to vector<1xf32>
      %26 = vector.shape_cast %25 : vector<1xf32> to vector<1x1x1xf32>
      %27 = vector.extract %26[0, 0, 0] : f32 from vector<1x1x1xf32>
      %28 = vector.broadcast %27 : f32 to vector<1x1xf32>
      %c0_21 = arith.constant 0 : index
      %c0_22 = arith.constant 0 : index
      %29 = vector.load %arg4[%c0_21, %c0_22] : memref<1x1xf32, #tpu.memory_space<vmem>>, vector<1x1xf32>
      tpu.vector_store %arg4[%c0_21, %c0_22], %28 {strides = array<i32>} : memref<1x1xf32, #tpu.memory_space<vmem>>, vector<1x1xf32>,
    } else {
    }
    return
  }
  func.func @transform_0(%arg0: i32) -> (i32, i32) {
    %c0_i32 = arith.constant 0 : i32
    %c0_i32_0 = arith.constant 0 : i32
    return %arg0, %c0_i32 : i32, i32
  }
  func.func @transform_1(%arg0: i32) -> (i32, i32) {
    %c0_i32 = arith.constant 0 : i32
    %c0_i32_0 = arith.constant 0 : i32
    return %arg0, %c0_i32 : i32, i32
  }
  func.func @transform_2(%arg0: i32) -> (i32, i32) {
    %c0_i32 = arith.constant 0 : i32
    %c0_i32_0 = arith.constant 0 : i32
    %c0_i32_1 = arith.constant 0 : i32
    return %c0_i32, %c0_i32_0 : i32, i32
  }
  func.func @transform_3(%arg0: i32) -> (i32, i32) {
    %c0_i32 = arith.constant 0 : i32
    %c0_i32_0 = arith.constant 0 : i32
    %c0_i32_1 = arith.constant 0 : i32
    return %c0_i32, %c0_i32_0 : i32, i32
  }
}

</mosaic_0001>

<bundles_post_ra>
// kernel: tpu_custom_call.1
= control target key start
LH: loop header
LB: loop body
LE: loop exit
PB: predicated region body
PF: predicated region fallthrough
CT: control target
= control target key end

     0   :  { %9 = vsyncpa [#allocation5], 0  ;;  %s315_s0 = inlined_call_operand.hbm [shape: f32[16,128], index: 0, kind: input, shape index: {}]   ;;  %s316_s1 = inlined_call_operand.hbm [shape: f32[16,128], index: 1, kind: input, shape index: {}]   ;;  %s317_s2 = inlined_call_operand.hbm [shape: f32[1,1], index: 2, kind: output, shape index: {0}]   ;;  %s318_s3 = inlined_call_operand.hbm [shape: f32[1,1], index: 3, kind: output, shape index: {1}]  }
   0x1   :  { %10 = vsyncpa [#allocation8], 0 }
   0x2   :  { %11 = vsyncpa [#allocation6], 0 }
   0x3   :  { %12 = vsyncpa [#allocation11], 0  ;;  %s239_s12 = smov [#allocation4]   ;;  %s143_s16 = scalar_lea.hbm %s315_s0, 256 }
   0x4   :  { %s18_s13 = sshll.u32 %s239_s12, 4  ;;  %p144_p0 = scmp.ne.s32.totalorder %s315_s0, %s143_s16  ;;  %s19_s13 = int_to_ptr.vmem [resolvable:$true] %s18_s13 }
   0x5   :  { %p147_p1 = scmp.lt.u32.totalorder %s143_s16, %s315_s0 }
   0x7   :  { %p149_p2 = pnand %p147_p1, %p144_p0 }
   0x9   :  { %152 = shalt.err (!%p149_p2)
}
   0xa   :  { %s153_s21 = scalar_lea.vmem %s19_s13, 256  ;;  %p158_p4 = scmp.lt.s32.totalorder %s19_s13, %s19_s13 }
   0xb   :  { %p154_p3 = scmp.ne.s32.totalorder %s19_s13, %s153_s21  ;;  %p159_p5 = scmp.lt.s32.totalorder %s153_s21, %s153_s21 }
   0xd   :  { %p160_p6 = por %p159_p5, %p158_p4 }
   0xf   :  { %p161_p7 = pnand %p160_p6, %p154_p3 }
  0x11   :  { %164 = shalt.err (!%p161_p7)
}
  0x12   :  { %s240_s22 = smov 128   ;;  %s241_s23 = smov 8  }
  0x13   :  { %24 = dma.hbm_to_vmem [thread:$0]  %s315_s0, 256, %s19_s13, [#allocation5], %s240_s22, %s240_s22, %s241_s23  }
  0x14   :  { %s242_s26 = smov [#allocation7]   ;;  %s165_s30 = scalar_lea.hbm %s316_s1, 256 }
  0x15   :  { %s30_s27 = sshll.u32 %s242_s26, 4  ;;  %p166_p8 = scmp.ne.s32.totalorder %s316_s1, %s165_s30  ;;  %s31_s27 = int_to_ptr.vmem [resolvable:$true] %s30_s27 }
  0x16   :  { %p169_p9 = scmp.lt.u32.totalorder %s165_s30, %s316_s1 }
  0x18   :  { %p171_p10 = pnand %p169_p9, %p166_p8 }
  0x1a   :  { %174 = shalt.err (!%p171_p10)
}
  0x1b   :  { %s175_s8 = scalar_lea.vmem %s31_s27, 256  ;;  %p180_p12 = scmp.lt.s32.totalorder %s31_s27, %s31_s27 }
  0x1c   :  { %p176_p11 = scmp.ne.s32.totalorder %s31_s27, %s175_s8  ;;  %p181_p13 = scmp.lt.s32.totalorder %s175_s8, %s175_s8 }
  0x1e   :  { %p182_p0 = por %p181_p13, %p180_p12 }
  0x20   :  { %p183_p1 = pnand %p182_p0, %p176_p11 }
  0x22   :  { %186 = shalt.err (!%p183_p1)
}
  0x23   :  { %36 = dma.hbm_to_vmem [thread:$0]  %s316_s1, 256, %s31_s27, [#allocation8], %s240_s22, %s240_s22, %s241_s23  }
  0x24   :  { %231 = dma.done.wait [#allocation5], 256  }
  0x25   :  { %232 = vsyncadd [#allocation5], 4294967040 }
  0x26   :  { %233 = dma.done.wait [#allocation8], 256  }
  0x27   :  { %234 = vsyncadd [#allocation8], 4294967040  ;;  %v51_v0 = vld [vmem:[#allocation4] sm:$0xff]  ;;  %v52_v1 = vld [vmem:[#allocation4 + $0x8] sm:$0xff]  ;;  %s243_s1 = smov [#allocation9]   ;;  %vm87_vm0 = vcmask 0  }
  0x28   :  { %v53_v2 = vld [vmem:[#allocation7] sm:$0xff]  ;;  %v54_v3 = vld [vmem:[#allocation7 + $0x8] sm:$0xff]  ;;  %s109_s10 = sshll.u32 %s243_s1, 4  ;;  %s244_s12 = smov [#allocation10]   ;;  %s110_s10 = int_to_ptr.vmem [resolvable:$true] %s109_s10 }
  0x29   :  { %v57_v4 = vmul.f32 %v53_v2, %v51_v0  ;;  %v58_v5 = vmul.f32 %v54_v3, %v52_v1  ;;  %v65_v6 = vadd.f32 %v53_v2, %v51_v0  ;;  %v66_v7 = vadd.f32 %v54_v3, %v52_v1  ;;  %s119_s13 = sshll.u32 %s244_s12, 4  ;;  %s187_s14 = scalar_lea.vmem %s110_s10, 16  ;;  %s120_s13 = int_to_ptr.vmem [resolvable:$true] %s119_s13 }
  0x2a   :  { %p188_p2 = scmp.ne.s32.totalorder %s110_s10, %s187_s14  ;;  %s191_s15 = scalar_lea.vmem %s110_s10, 32 }
  0x2b   :  { %v76_v8 = vadd.f32 %v58_v5, %v57_v4  ;;  %v91_v9 = vadd.f32 %v66_v7, %v65_v6  ;;  %p192_p3 = scmp.lt.s32.totalorder %s110_s10, %s110_s10  ;;  %p193_p4 = scmp.lt.s32.totalorder %s191_s15, %s187_s14 }
  0x2d   :  { %77 = vadd.xlane.f32.xlu0 %v76_v8  ;;  %p194_p5 = por %p193_p4, %p192_p3 }
  0x2f   :  { %p195_p6 = pnand %p194_p5, %p188_p2 }
  0x31   :  { %92 = vadd.xlane.f32.xlu0 %v91_v9 }
  0xba   :  { %v78_v10 = vpop.xlane.xlu0 %77 }
  0xbb   :  { %v79_v11 = vrot.slane %v78_v10, 4 }
  0xbd   :  { %v80_v12 = vadd.f32 %v79_v11, %v78_v10 }
  0xbe   :  { %v93_v13 = vpop.xlane.xlu0 %92 }
  0xbf   :  { %v81_v14 = vrot.slane %v80_v12, 2  ;;  %v94_v15 = vrot.slane %v93_v13, 4 }
  0xc1   :  { %v95_v16 = vadd.f32 %v94_v15, %v93_v13  ;;  %v82_v17 = vadd.f32 %v81_v14, %v80_v12 }
  0xc3   :  { %v96_v18 = vrot.slane %v95_v16, 2  ;;  %v83_v19 = vrot.slane %v82_v17, 1 }
  0xc5   :  { %v97_v20 = vadd.f32 %v96_v18, %v95_v16  ;;  %v84_v21 = vadd.f32 %v83_v19, %v82_v17 }
  0xc7   :  { %133 = vpush %v84_v21  ;;  %v98_v22 = vrot.slane %v97_v20, 1 }
  0xc9   :  { %v99_v23 = vadd.f32 %v98_v22, %v97_v20 }
  0xcb   :  { %135 = vpush %v99_v23 }
  0xf8   :  { %s134_s11 = spop %133 }
  0xf9   :  { %v86_v24 = vstv %s134_s11 }
  0xfa   :  { %88 = vst.msk [vmem:[#allocation9] sm:$0x1] %vm87_vm0, %v86_v24 }
  0xfb   :  { %198 = shalt.err (!%p195_p6)
}
  0xfc   :  { %s199_s18 = scalar_lea.hbm %s317_s2, 16 }
  0xfd   :  { %p200_p7 = scmp.ne.s32.totalorder %s317_s2, %s199_s18  ;;  %p203_p8 = scmp.lt.u32.totalorder %s199_s18, %s317_s2 }
  0xff   :  { %p205_p9 = pnand %p203_p8, %p200_p7 }
 0x101   :  { %208 = shalt.err (!%p205_p9)
}
 0x102   :  { %112 = dma.vmem_to_hbm [thread:$0]  %s110_s10, 16, %s317_s2, [#allocation6]  }
 0x103   :  { %s136_s25 = spop %135  ;;  %s209_s26 = scalar_lea.vmem %s120_s13, 16 }
 0x104   :  { %v101_v25 = vstv %s136_s25  ;;  %p210_p10 = scmp.ne.s32.totalorder %s120_s13, %s209_s26  ;;  %s213_s27 = scalar_lea.vmem %s120_s13, 32 }
 0x105   :  { %102 = vst.msk [vmem:[#allocation10] sm:$0x1] %vm87_vm0, %v101_v25  ;;  %p214_p11 = scmp.lt.s32.totalorder %s120_s13, %s120_s13  ;;  %p215_p12 = scmp.lt.s32.totalorder %s213_s27, %s209_s26 }
 0x107   :  { %p216_p13 = por %p215_p12, %p214_p11 }
 0x109   :  { %p217_p0 = pnand %p216_p13, %p210_p10 }
 0x10b   :  { %220 = shalt.err (!%p217_p0)
}
 0x10c   :  { %s221_s30 = scalar_lea.hbm %s318_s3, 16 }
 0x10d   :  { %p222_p1 = scmp.ne.s32.totalorder %s318_s3, %s221_s30  ;;  %p225_p2 = scmp.lt.u32.totalorder %s221_s30, %s318_s3 }
 0x10f   :  { %p227_p3 = pnand %p225_p2, %p222_p1 }
 0x111   :  { %230 = shalt.err (!%p227_p3)
}
 0x112   :  { %122 = dma.vmem_to_hbm [thread:$0]  %s120_s13, 16, %s318_s3, [#allocation11]  }
 0x113   :  { %235 = dma.done.wait [#allocation6], 16  }
 0x114   :  { %236 = vsyncadd [#allocation6], 4294967280 }
 0x115   :  { %237 = dma.done.wait [#allocation11], 16  }
 0x116   :  { %238 = vsyncadd [#allocation11], 4294967280 }
 0x117   :  { %129 = vsyncpa [#allocation5], 1 }
 0x118   :  { %130 = vsyncpa [#allocation8], 1 }
 0x119   :  { %131 = vsyncpa [#allocation6], 1 }
 0x11a   :  { %132 = vsyncpa [#allocation11], 1 }

</bundles_post_ra>
